<compile_context>
chip_gen: v7x
topology: tpu7x:2x2x1
jax: 0.10.0
libtpu: 0.0.40
codegen_flags: <defaults>
</compile_context>

<pallas_src>
import numpy as np
import jax
import jax.numpy as jnp
from jax.experimental import pallas as pl
from jax.experimental.pallas import tpu as pltpu

LEAKY_SLOPE = 0.2
LANE = 128          # hidden dim (VMEM-only) is padded to a multiple of this
TILE_M = 512        # rows per grid step (sweep parameter); multiple of 8


def _round_up(x, m):
    return (x + m - 1) // m * m


# ---------------------------------------------------------------------------
# kernel: one row-tile of  fc2(LeakyReLU(fc1(x)))
# ---------------------------------------------------------------------------
def _mlp_kernel(x_ref, w1_ref, b1_ref, w2_ref, b2_ref, o_ref):
    # x bf16 [tm, ch]; w1 bf16 [ch, cp_p]; b1 f32 [1, cp_p];
    # w2 bf16 [cp_p, out_ch]; b2 f32 [1, out_ch]; o f32 [tm, out_ch]
    h = jnp.dot(x_ref[...], w1_ref[...],
                preferred_element_type=jnp.float32) + b1_ref[...]
    h = jnp.maximum(h, LEAKY_SLOPE * h)                 # LeakyReLU(0.2), f32
    o_ref[...] = (jnp.dot(h.astype(jnp.bfloat16), w2_ref[...],
                          preferred_element_type=jnp.float32) + b2_ref[...])


# ---------------------------------------------------------------------------
# wrapper: bf16-pack x, pad only the hidden dim, tile rows, call, un-pad rows
# ---------------------------------------------------------------------------
def mlp_cp_w_forward(x, params, *, tile_m=TILE_M):
    """x: [..., ch]  ->  [..., num_cp*4]  (same math as MLP_CP_W.forward)."""
    w1, b1, w2, b2 = params['w1'], params['b1'], params['w2'], params['b2']
    ch, cp_ch = w1.shape
    out_ch = w2.shape[1]

    lead = x.shape[:-1]
    m = int(np.prod(lead)) if lead else 1

    # Row tile: as large as requested, but capped so the grid has >=2 steps
    # (keeps both TensorCores busy on v7x; neutral on v5e/v6e). Multiple of 8.
    tile_m_eff = max(8, min(tile_m, _round_up(pl.cdiv(m, 2), 8)))
    m_p = _round_up(max(m, 1), tile_m_eff)
    grid = (m_p // tile_m_eff,)

    # Only the VMEM-resident hidden dim is lane-padded (exact: padded h
    # columns stay 0 and contribute nothing through the padded w2 rows).
    cp_p = _round_up(cp_ch, LANE)

    # bf16 streamed input (the pad .at[].set copy materializes anyway, so the
    # cast is free here and halves the dominant input DMA + its double buffer).
    xp = jnp.zeros((m_p, ch), jnp.bfloat16).at[:m, :].set(
        x.reshape(m, ch).astype(jnp.bfloat16))
    w1p = jnp.zeros((ch, cp_p), jnp.bfloat16).at[:, :cp_ch].set(
        w1.astype(jnp.bfloat16))
    b1p = jnp.zeros((1, cp_p), jnp.float32).at[:, :cp_ch].set(
        b1.reshape(1, cp_ch).astype(jnp.float32))
    w2p = jnp.zeros((cp_p, out_ch), jnp.bfloat16).at[:cp_ch, :].set(
        w2.astype(jnp.bfloat16))
    b2p = b2.reshape(1, out_ch).astype(jnp.float32)

    def run(single_buffer_weights):
        w_kw = ({'pipeline_mode': pl.Buffered(1)} if single_buffer_weights
                else {})
        n_wbuf = 1 if single_buffer_weights else 2

        # Explicit VMEM budget so the scoped limit never silently caps the tile.
        w_bytes = (ch * cp_p + cp_p * out_ch) * 2 + (cp_p + out_ch) * 4
        io_bytes = 2 * (tile_m_eff * ch * 2) + 2 * (tile_m_eff * out_ch * 4)
        h_bytes = tile_m_eff * cp_p * 4
        vmem_limit = int(min(64 << 20,
                             max(2 * (n_wbuf * w_bytes + io_bytes + h_bytes),
                                 16 << 20)))

        return pl.pallas_call(
            _mlp_kernel,
            out_shape=jax.ShapeDtypeStruct((m_p, out_ch), jnp.float32),
            grid=grid,
            in_specs=[
                pl.BlockSpec((tile_m_eff, ch), lambda i: (i, 0)),        # x tile
                pl.BlockSpec((ch, cp_p), lambda i: (0, 0), **w_kw),      # w1
                pl.BlockSpec((1, cp_p), lambda i: (0, 0), **w_kw),       # b1
                pl.BlockSpec((cp_p, out_ch), lambda i: (0, 0), **w_kw),  # w2
                pl.BlockSpec((1, out_ch), lambda i: (0, 0), **w_kw),     # b2
            ],
            out_specs=pl.BlockSpec((tile_m_eff, out_ch), lambda i: (i, 0)),
            compiler_params=pltpu.CompilerParams(
                dimension_semantics=("parallel",),
                vmem_limit_bytes=vmem_limit),
        )(xp, w1p, b1p, w2p, b2p)

    try:
        out = run(True)      # single-buffer the constant-index weight blocks
    except Exception:
        out = run(False)     # fallback if pipeline_mode=Buffered(1) unsupported

    return out[:m, :].reshape(*lead, out_ch)


# ---------------------------------------------------------------------------
# deterministic parameter init (mirrors the nn.Module shapes; W stored [in,out])
# ---------------------------------------------------------------------------
def init_params(key, ch, cp_ch, num_cp):
    ks = jax.random.split(key, 4)

    def lin_w(k, fin, fout):
        return (jax.random.normal(k, (fin, fout), jnp.float32)
                / np.sqrt(fin).astype(np.float32))

    def lin_b(k, fout):
        return jax.random.normal(k, (fout,), jnp.float32) * 0.02

    return {
        'w1': lin_w(ks[0], ch, cp_ch), 'b1': lin_b(ks[1], cp_ch),
        'w2': lin_w(ks[2], cp_ch, num_cp * 4), 'b2': lin_b(ks[3], num_cp * 4),
    }


# ---------------------------------------------------------------------------
# pure-JAX f32 reference (same math as the PyTorch forward)
# ---------------------------------------------------------------------------
def reference_forward(x, p):
    h = x @ p['w1'] + p['b1']
    h = jnp.where(h > 0, h, LEAKY_SLOPE * h)
    return h @ p['w2'] + p['b2']


if __name__ == "__main__":
    B, N, ch, cp_ch, num_cp = 2, 64, 16, 32, 8   # out features = num_cp*4 = 32

    key = jax.random.PRNGKey(0)
    k_x, k_p = jax.random.split(key)
    x = jax.random.normal(k_x, (B, N, ch), jnp.float32)
    params = init_params(k_p, ch, cp_ch, num_cp)

    out = mlp_cp_w_forward(x, params)
    jax.block_until_ready(out)

    ref = reference_forward(x, params)
    assert out.shape == (B, N, num_cp * 4), out.shape
    # bf16 MXU inputs with f32 accumulation vs. full-f32 reference
    assert np.allclose(np.asarray(out), np.asarray(ref), rtol=2e-2, atol=2e-2)

    print("KERNEL_OK")
</pallas_src>

<mosaic_0001>
module attributes {stable_mosaic.version = 11 : i64} {
  func.func @_mlp_kernel(%arg0: i32, %arg1: memref<64x16xbf16, #tpu.memory_space<vmem>>, %arg2: memref<16x128xbf16, #tpu.memory_space<vmem>>, %arg3: memref<1x128xf32, #tpu.memory_space<vmem>>, %arg4: memref<128x32xbf16, #tpu.memory_space<vmem>>, %arg5: memref<1x32xf32, #tpu.memory_space<vmem>>, %arg6: memref<64x32xf32, #tpu.memory_space<vmem>>) attributes {dimension_semantics = [#tpu.dimension_semantics<parallel>], iteration_bounds = array<i64: 2>, scalar_prefetch = 0 : i64, scratch_operands = 0 : i64, tpu.core_type = #tpu.core_type<tc>, window_params = [{transform_indices = @transform_0, window_bounds = array<i64: 64, 16>}, {pipeline_mode = #tpu.pipeline_mode<synchronous>, transform_indices = @transform_1, window_bounds = array<i64: 16, 128>}, {pipeline_mode = #tpu.pipeline_mode<synchronous>, transform_indices = @transform_2, window_bounds = array<i64: 1, 128>}, {pipeline_mode = #tpu.pipeline_mode<synchronous>, transform_indices = @transform_3, window_bounds = array<i64: 128, 32>}, {pipeline_mode = #tpu.pipeline_mode<synchronous>, transform_indices = @transform_4, window_bounds = array<i64: 1, 32>}, {transform_indices = @transform_5, window_bounds = array<i64: 64, 32>}]} {
    %c0 = arith.constant 0 : index
    %c0_0 = arith.constant 0 : index
    %0 = vector.load %arg1[%c0, %c0_0] : memref<64x16xbf16, #tpu.memory_space<vmem>>, vector<64x16xbf16>
    %c0_1 = arith.constant 0 : index
    %c0_2 = arith.constant 0 : index
    %1 = vector.load %arg2[%c0_1, %c0_2] : memref<16x128xbf16, #tpu.memory_space<vmem>>, vector<16x128xbf16>
    %cst = arith.constant dense<0.000000e+00> : vector<64x128xf32>
    %2 = tpu.matmul %0, %1, %cst {dimension_numbers = #tpu.dot_dimension_numbers<[1], [0], [0], [1], [0, 0, 1, 1], [], []>} : vector<64x16xbf16>, vector<16x128xbf16>, vector<64x128xf32> -> vector<64x128xf32>
    %c0_3 = arith.constant 0 : index
    %c0_4 = arith.constant 0 : index
    %3 = vector.load %arg3[%c0_3, %c0_4] : memref<1x128xf32, #tpu.memory_space<vmem>>, vector<1x128xf32>
    %4 = vector.broadcast %3 : vector<1x128xf32> to vector<64x128xf32>
    %5 = arith.addf %2, %4 : vector<64x128xf32>
    %cst_5 = arith.constant 2.000000e-01 : f32
    %6 = vector.broadcast %cst_5 : f32 to vector<64x128xf32>
    %7 = arith.mulf %6, %5 : vector<64x128xf32>
    %8 = arith.maximumf %5, %7 : vector<64x128xf32>
    %9 = arith.truncf %8 : vector<64x128xf32> to vector<64x128xbf16>
    %c0_6 = arith.constant 0 : index
    %c0_7 = arith.constant 0 : index
    %10 = vector.load %arg4[%c0_6, %c0_7] : memref<128x32xbf16, #tpu.memory_space<vmem>>, vector<128x32xbf16>
    %cst_8 = arith.constant dense<0.000000e+00> : vector<64x32xf32>
    %11 = tpu.matmul %9, %10, %cst_8 {dimension_numbers = #tpu.dot_dimension_numbers<[1], [0], [0], [1], [0, 0, 1, 1], [], []>} : vector<64x128xbf16>, vector<128x32xbf16>, vector<64x32xf32> -> vector<64x32xf32>
    %c0_9 = arith.constant 0 : index
    %c0_10 = arith.constant 0 : index
    %12 = vector.load %arg5[%c0_9, %c0_10] : memref<1x32xf32, #tpu.memory_space<vmem>>, vector<1x32xf32>
    %13 = vector.broadcast %12 : vector<1x32xf32> to vector<64x32xf32>
    %14 = arith.addf %11, %13 : vector<64x32xf32>
    %c0_11 = arith.constant 0 : index
    %c0_12 = arith.constant 0 : index
    %15 = vector.load %arg6[%c0_11, %c0_12] : memref<64x32xf32, #tpu.memory_space<vmem>>, vector<64x32xf32>
    tpu.vector_store %arg6[%c0_11, %c0_12], %14 {strides = array<i32>} : memref<64x32xf32, #tpu.memory_space<vmem>>, vector<64x32xf32>,
    return
  }
  func.func @transform_0(%arg0: i32) -> (i32, i32) {
    %c0_i32 = arith.constant 0 : i32
    %c0_i32_0 = arith.constant 0 : i32
    return %arg0, %c0_i32 : i32, i32
  }
  func.func @transform_1(%arg0: i32) -> (i32, i32) {
    %c0_i32 = arith.constant 0 : i32
    %c0_i32_0 = arith.constant 0 : i32
    %c0_i32_1 = arith.constant 0 : i32
    return %c0_i32, %c0_i32_0 : i32, i32
  }
  func.func @transform_2(%arg0: i32) -> (i32, i32) {
    %c0_i32 = arith.constant 0 : i32
    %c0_i32_0 = arith.constant 0 : i32
    %c0_i32_1 = arith.constant 0 : i32
    return %c0_i32, %c0_i32_0 : i32, i32
  }
  func.func @transform_3(%arg0: i32) -> (i32, i32) {
    %c0_i32 = arith.constant 0 : i32
    %c0_i32_0 = arith.constant 0 : i32
    %c0_i32_1 = arith.constant 0 : i32
    return %c0_i32, %c0_i32_0 : i32, i32
  }
  func.func @transform_4(%arg0: i32) -> (i32, i32) {
    %c0_i32 = arith.constant 0 : i32
    %c0_i32_0 = arith.constant 0 : i32
    %c0_i32_1 = arith.constant 0 : i32
    return %c0_i32, %c0_i32_0 : i32, i32
  }
  func.func @transform_5(%arg0: i32) -> (i32, i32) {
    %c0_i32 = arith.constant 0 : i32
    %c0_i32_0 = arith.constant 0 : i32
    return %arg0, %c0_i32 : i32, i32
  }
}

module attributes {stable_mosaic.version = 11 : i64} {
  func.func @_mlp_kernel(%arg0: i32, %arg1: memref<64x16xbf16, #tpu.memory_space<vmem>>, %arg2: memref<16x128xbf16, #tpu.memory_space<vmem>>, %arg3: memref<1x128xf32, #tpu.memory_space<vmem>>, %arg4: memref<128x32xbf16, #tpu.memory_space<vmem>>, %arg5: memref<1x32xf32, #tpu.memory_space<vmem>>, %arg6: memref<64x32xf32, #tpu.memory_space<vmem>>) attributes {dimension_semantics = [#tpu.dimension_semantics<parallel>], iteration_bounds = array<i64: 2>, scalar_prefetch = 0 : i64, scratch_operands = 0 : i64, tpu.core_type = #tpu.core_type<tc>, window_params = [{transform_indices = @transform_0, window_bounds = array<i64: 64, 16>}, {pipeline_mode = #tpu.pipeline_mode<synchronous>, transform_indices = @transform_1, window_bounds = array<i64: 16, 128>}, {pipeline_mode = #tpu.pipeline_mode<synchronous>, transform_indices = @transform_2, window_bounds = array<i64: 1, 128>}, {pipeline_mode = #tpu.pipeline_mode<synchronous>, transform_indices = @transform_3, window_bounds = array<i64: 128, 32>}, {pipeline_mode = #tpu.pipeline_mode<synchronous>, transform_indices = @transform_4, window_bounds = array<i64: 1, 32>}, {transform_indices = @transform_5, window_bounds = array<i64: 64, 32>}]} {
    %c0 = arith.constant 0 : index
    %c0_0 = arith.constant 0 : index
    %0 = vector.load %arg1[%c0, %c0_0] : memref<64x16xbf16, #tpu.memory_space<vmem>>, vector<64x16xbf16>
    %c0_1 = arith.constant 0 : index
    %c0_2 = arith.constant 0 : index
    %1 = vector.load %arg2[%c0_1, %c0_2] : memref<16x128xbf16, #tpu.memory_space<vmem>>, vector<16x128xbf16>
    %cst = arith.constant dense<0.000000e+00> : vector<64x128xf32>
    %2 = tpu.matmul %0, %1, %cst {dimension_numbers = #tpu.dot_dimension_numbers<[1], [0], [0], [1], [0, 0, 1, 1], [], []>} : vector<64x16xbf16>, vector<16x128xbf16>, vector<64x128xf32> -> vector<64x128xf32>
    %c0_3 = arith.constant 0 : index
    %c0_4 = arith.constant 0 : index
    %3 = vector.load %arg3[%c0_3, %c0_4] : memref<1x128xf32, #tpu.memory_space<vmem>>, vector<1x128xf32>
    %4 = vector.broadcast %3 : vector<1x128xf32> to vector<64x128xf32>
    %5 = arith.addf %2, %4 : vector<64x128xf32>
    %cst_5 = arith.constant 2.000000e-01 : f32
    %6 = vector.broadcast %cst_5 : f32 to vector<64x128xf32>
    %7 = arith.mulf %6, %5 : vector<64x128xf32>
    %8 = arith.maximumf %5, %7 : vector<64x128xf32>
    %9 = arith.truncf %8 : vector<64x128xf32> to vector<64x128xbf16>
    %c0_6 = arith.constant 0 : index
    %c0_7 = arith.constant 0 : index
    %10 = vector.load %arg4[%c0_6, %c0_7] : memref<128x32xbf16, #tpu.memory_space<vmem>>, vector<128x32xbf16>
    %cst_8 = arith.constant dense<0.000000e+00> : vector<64x32xf32>
    %11 = tpu.matmul %9, %10, %cst_8 {dimension_numbers = #tpu.dot_dimension_numbers<[1], [0], [0], [1], [0, 0, 1, 1], [], []>} : vector<64x128xbf16>, vector<128x32xbf16>, vector<64x32xf32> -> vector<64x32xf32>
    %c0_9 = arith.constant 0 : index
    %c0_10 = arith.constant 0 : index
    %12 = vector.load %arg5[%c0_9, %c0_10] : memref<1x32xf32, #tpu.memory_space<vmem>>, vector<1x32xf32>
    %13 = vector.broadcast %12 : vector<1x32xf32> to vector<64x32xf32>
    %14 = arith.addf %11, %13 : vector<64x32xf32>
    %c0_11 = arith.constant 0 : index
    %c0_12 = arith.constant 0 : index
    %15 = vector.load %arg6[%c0_11, %c0_12] : memref<64x32xf32, #tpu.memory_space<vmem>>, vector<64x32xf32>
    tpu.vector_store %arg6[%c0_11, %c0_12], %14 {strides = array<i32>} : memref<64x32xf32, #tpu.memory_space<vmem>>, vector<64x32xf32>,
    return
  }
  func.func @transform_0(%arg0: i32) -> (i32, i32) {
    %c0_i32 = arith.constant 0 : i32
    %c0_i32_0 = arith.constant 0 : i32
    return %arg0, %c0_i32 : i32, i32
  }
  func.func @transform_1(%arg0: i32) -> (i32, i32) {
    %c0_i32 = arith.constant 0 : i32
    %c0_i32_0 = arith.constant 0 : i32
    %c0_i32_1 = arith.constant 0 : i32
    return %c0_i32, %c0_i32_0 : i32, i32
  }
  func.func @transform_2(%arg0: i32) -> (i32, i32) {
    %c0_i32 = arith.constant 0 : i32
    %c0_i32_0 = arith.constant 0 : i32
    %c0_i32_1 = arith.constant 0 : i32
    return %c0_i32, %c0_i32_0 : i32, i32
  }
  func.func @transform_3(%arg0: i32) -> (i32, i32) {
    %c0_i32 = arith.constant 0 : i32
    %c0_i32_0 = arith.constant 0 : i32
    %c0_i32_1 = arith.constant 0 : i32
    return %c0_i32, %c0_i32_0 : i32, i32
  }
  func.func @transform_4(%arg0: i32) -> (i32, i32) {
    %c0_i32 = arith.constant 0 : i32
    %c0_i32_0 = arith.constant 0 : i32
    %c0_i32_1 = arith.constant 0 : i32
    return %c0_i32, %c0_i32_0 : i32, i32
  }
  func.func @transform_5(%arg0: i32) -> (i32, i32) {
    %c0_i32 = arith.constant 0 : i32
    %c0_i32_0 = arith.constant 0 : i32
    return %arg0, %c0_i32 : i32, i32
  }
}

</mosaic_0001>

<bundles_post_ra>
// kernel: tpu_custom_call.1
= control target key start
LH: loop header
LB: loop body
LE: loop exit
PB: predicated region body
PF: predicated region fallthrough
CT: control target
= control target key end

     0   :  { %s727_s18 = smov 0   ;;  %s793_s0 = inlined_call_operand.vmem [shape: bf16[128,16], index: 0, kind: input, shape index: {}]   ;;  %s794_s1 = inlined_call_operand.vmem [shape: bf16[16,128], index: 1, kind: input, shape index: {}]   ;;  %s795_s2 = inlined_call_operand.vmem [shape: f32[1,128], index: 2, kind: input, shape index: {}]   ;;  %s796_s3 = inlined_call_operand.vmem [shape: bf16[128,32], index: 3, kind: input, shape index: {}]   ;;  %s797_s4 = inlined_call_operand.vmem [shape: f32[1,32], index: 4, kind: input, shape index: {}]   ;;  %s798_s5 = inlined_call_operand.vmem [shape: f32[128,32], index: 5, kind: output, shape index: {}]  }
   0x1 LB: > { %s571_s19 = sadd.s32 4294967295, %s695_s18   ;;  %p575_p0 = scmp.ge.s32.totalorder %s695_s18, 1  ;;  %s695_s18 = sphi %s727_s18, %s15_s18  }
   0x2   : > { %p188_p1 = scmp.lt.s32.totalorder %s695_s18, 3 }
   0x4   : > { %p189_p2 = pnand %p575_p0, %p188_p1 }
   0x5   : > { %v676_v0 = vld [vmem:[%s794_s1] sm:$0xff] (!%p189_p2)   ;;  %s576_s22 = sshll.u32 (!%p189_p2), %s571_s19, 3  ;;  %v682_v2 = vld [vmem:[%s796_s3 + $0x8] sm:$0xff] (!%p189_p2)   ;;  %vm272_vm0 = vcmask (!%p189_p2), 130048   ;;  %v683_v3 = vld [vmem:[%s796_s3 + $0x10] sm:$0xff] (!%p189_p2)   ;;  %vm506_vm1 = vcmask (!%p189_p2), 261120  }
   0x6   : > { %192 = sbr.rel (%p189_p2) target bundleno = 468 (0x1d4), region = 40  ;;  %p217_p3 = scmp.lt.s32.totalorder (!%p189_p2), %s576_s22, 15  ;;  %618 = vmatprep.subr.bf16.mxu0 (!%p189_p2), %v676_v0  ;;  %v681_v1 = vld [vmem:[%s796_s3] sm:$0xff] (!%p189_p2)   ;;  %v684_v7 = vld [vmem:[%s796_s3 + $0x18] sm:$0xff] (!%p189_p2)   ;;  %v686_v10 = vld [vmem:[%s796_s3 + $0x28] sm:$0xff] (!%p189_p2)  }
   0x7   : > { %619 = vmatpush3.bf16.msra.mxu0 (!%p189_p2), %v676_v0  ;;  %652 = vmatprep.subr.bf16.mxu1 (!%p189_p2), %v681_v1  ;;  %v685_v9 = vld [vmem:[%s796_s3 + $0x20] sm:$0xff] (!%p189_p2)   ;;  %v687_v11 = vld [vmem:[%s796_s3 + $0x30] sm:$0xff] (!%p189_p2)   ;;  %v688_v12 = vld [vmem:[%s796_s3 + $0x38] sm:$0xff] (!%p189_p2)  }
   0x8   : > { %628 = vmatprep.subr.bf16.mxu0 (!%p189_p2), %v681_v1  ;;  %660 = vmatpush3.bf16.msra.mxu1 (!%p189_p2), %v681_v1  ;;  %v580_v13 = vld [vmem:[%s795_s2] ss:$0 sm:$0xff] (!%p189_p2) }
   0x9   : > { %653 = vmatprep.subr.bf16.mxu1 (!%p189_p2), %v682_v2  ;;  %v590_v50 = vld [vmem:[%s797_s4] ss:$0 sm:$0xff] (!%p189_p2) }
   0xc   : > { %661 = vmatpush3.bf16.msra.mxu1 (!%p189_p2), %v682_v2 }
   0xd   : > { %s800_s22 = smov (!%p217_p3, %s576_s22), 15  ;;  %654 = vmatprep.subr.bf16.mxu1 %v683_v3 }
   0xe   : > { %s577_s27 = sshll.u32 %s800_s22, 2  ;;  %s579_s21 = sshll.u32 %s800_s22, 3 }
   0xf   : > { %s220_s30 = scalar_lea.vmem %s793_s0, %s577_s27  ;;  %s226_s27 = scalar_lea.vmem %s798_s5, %s579_s21 }
  0x10   : > { %v677_v4 = vld [vmem:[%s220_s30] sm:$0xff]   ;;  %v678_v5 = vld [vmem:[%s220_s30 + $0x8] sm:$0xff]   ;;  %v679_v6 = vld [vmem:[%s220_s30 + $0x10] sm:$0xff]   ;;  %662 = vmatpush3.bf16.msra.mxu1 %v683_v3 }
  0x11   : > { %620 = vmatprep.mubr.msk.bf16.mxu0 %vm272_vm0, %v677_v4  ;;  %v680_v8 = vld [vmem:[%s220_s30 + $0x18] sm:$0xff]   ;;  %655 = vmatprep.subr.bf16.mxu1 %v684_v7 }
  0x12   : > { %621 = vmatmul.mubr.msk.bf16.vlgmr.msra.gmra.mrb[0].mxu0 %vm272_vm0, %v678_v5 }
  0x13   : > { %624 = vmatprep.mubr.msk.bf16.mxu0 %vm272_vm0, %v679_v6  ;;  %629 = vmatpush3.bf16.msra.mxu0 %v681_v1 }
  0x14   : > { %630 = vmatprep.subr.bf16.mxu0 %v682_v2  ;;  %663 = vmatpush3.bf16.msra.mxu1 %v684_v7 }
  0x15   : > { %656 = vmatprep.subr.bf16.mxu1 %v685_v9 }
  0x17   : > { %631 = vmatpush3.bf16.msra.mxu0 %v682_v2 }
  0x18   : > { %632 = vmatprep.subr.bf16.mxu0 %v683_v3  ;;  %664 = vmatpush3.bf16.msra.mxu1 %v685_v9 }
  0x19   : > { %657 = vmatprep.subr.bf16.mxu1 %v686_v10 }
  0x1a   : > { %625 = vmatmul.mubr.msk.bf16.gmra.mrb[4].mxu0 %vm272_vm0, %v680_v8 }
  0x1b   : > { %633 = vmatpush3.bf16.msra.mxu0 %v683_v3 }
  0x1c   : > { %634 = vmatprep.subr.bf16.mxu0 %v684_v7  ;;  %665 = vmatpush3.bf16.msra.mxu1 %v686_v10 }
  0x1d   : > { %658 = vmatprep.subr.bf16.mxu1 %v687_v11 }
  0x1f   : > { %635 = vmatpush3.bf16.msra.mxu0 %v684_v7 }
  0x20   : > { %636 = vmatprep.subr.bf16.mxu0 %v685_v9  ;;  %666 = vmatpush3.bf16.msra.mxu1 %v687_v11 }
  0x21   : > { %659 = vmatprep.subr.bf16.mxu1 %v688_v12 }
  0x23   : > { %637 = vmatpush3.bf16.msra.mxu0 %v685_v9 }
  0x24   : > { %638 = vmatprep.subr.bf16.mxu0 %v686_v10  ;;  %667 = vmatpush3.bf16.msra.mxu1 %v688_v12 }
  0x27   : > { %639 = vmatpush3.bf16.msra.mxu0 %v686_v10 }
  0x28   : > { %640 = vmatprep.subr.bf16.mxu0 %v687_v11 }
  0x2b   : > { %641 = vmatpush3.bf16.msra.mxu0 %v687_v11 }
  0x2c   : > { %642 = vmatprep.subr.bf16.mxu0 %v688_v12 }
  0x2f   : > { %643 = vmatpush3.bf16.msra.mxu0 %v688_v12 }
  0xe5   : > { %v622_v14 = vpop.f32.mrb[0].mxu0 }
  0xe6   : > { %v328_v15 = vadd.f32 %v622_v14, %v580_v13  ;;  %v319_v16 = vpop.f32.mrb[1].mxu0 }
  0xe7   : > { %v320_v17 = vadd.f32 %v580_v13, %v319_v16  ;;  %v623_v18 = vpop.f32.mrb[2].mxu0 }
  0xe8   : > { %v352_v19 = vmul.f32 0.2, %v328_v15  ;;  %v331_v20 = vadd.f32 %v623_v18, %v580_v13  ;;  %v322_v21 = vpop.f32.mrb[3].mxu0 }
  0xe9   : > { %v350_v22 = vmul.f32 0.2, %v320_v17  ;;  %v323_v23 = vadd.f32 %v580_v13, %v322_v21 }
  0xea   : > { %v353_v24 = vmul.f32 0.2, %v331_v20  ;;  %v360_v26 = vmax.f32 %v328_v15, %v352_v19 }
  0xeb   : > { %v351_v25 = vmul.f32 0.2, %v323_v23  ;;  %v358_v28 = vmax.f32 %v320_v17, %v350_v22 }
  0xec   : > { %v361_v27 = vmax.f32 %v331_v20, %v353_v24 }
  0xed   : > { %v359_v29 = vmax.f32 %v323_v23, %v351_v25  ;;  %v626_v30 = vpop.f32.mrb[4].mxu0 }
  0xee   : > { %v367_v31 = vpack.c.bf16 %v361_v27, %v360_v26  ;;  %v344_v32 = vadd.f32 %v626_v30, %v580_v13  ;;  %v335_v33 = vpop.f32.mrb[5].mxu0 }
  0xef   : > { %v336_v34 = vadd.f32 %v580_v13, %v335_v33  ;;  %v627_v35 = vpop.f32.mrb[6].mxu0  ;;  %v366_v36 = vpack.c.bf16 %v359_v29, %v358_v28 }
  0xf0   : > { %v356_v37 = vmul.f32 0.2, %v344_v32  ;;  %v347_v38 = vadd.f32 %v627_v35, %v580_v13  ;;  %v338_v39 = vpop.f32.mrb[7].mxu0 }
  0xf1   : > { %v354_v40 = vmul.f32 0.2, %v336_v34  ;;  %v339_v41 = vadd.f32 %v580_v13, %v338_v39  ;;  %644 = vmatprep.mubr.bf16.mxu0 %v366_v36 }
  0xf2   : > { %v357_v42 = vmul.f32 0.2, %v347_v38  ;;  %645 = vmatmul.mubr.bf16.vlgmr.msra.gmra.mrb[8].mxu0 %v367_v31  ;;  %v364_v44 = vmax.f32 %v344_v32, %v356_v37 }
  0xf3   : > { %v355_v43 = vmul.f32 0.2, %v339_v41  ;;  %v362_v46 = vmax.f32 %v336_v34, %v354_v40 }
  0xf4   : > { %v365_v45 = vmax.f32 %v347_v38, %v357_v42 }
  0xf5   : > { %v363_v47 = vmax.f32 %v339_v41, %v355_v43 }
  0xf6   : > { %v369_v48 = vpack.c.bf16 %v365_v45, %v364_v44 }
  0xf7   : > { %v368_v49 = vpack.c.bf16 %v363_v47, %v362_v46 }
  0xf9   : > { %648 = vmatprep.mubr.bf16.mxu1 %v368_v49 }
  0xfa   : > { %649 = vmatmul.mubr.bf16.vlgmr.msra.gmra.mrb[0].mxu1 %v369_v48 }
 0x1c5   : > { %v646_v51 = vpop.f32.mrb[8].mxu0 }
 0x1c6   : > { %v484_v52 = vadd.f32 %v646_v51, %v590_v50  ;;  %v475_v53 = vpop.f32.mrb[9].mxu0 }
 0x1c7   : > { %v476_v54 = vadd.f32 %v590_v50, %v475_v53  ;;  %v647_v55 = vpop.f32.mrb[10].mxu0 }
 0x1c8   : > { %509 = vst.msk [vmem:[%s226_s27 + $0x10] sm:$0xff] %vm506_vm1, %v484_v52  ;;  %v487_v56 = vadd.f32 %v647_v55, %v590_v50  ;;  %v478_v57 = vpop.f32.mrb[11].mxu0 }
 0x1c9   : > { %507 = vst.msk [vmem:[%s226_s27] sm:$0xff] %vm506_vm1, %v476_v54  ;;  %v479_v58 = vadd.f32 %v590_v50, %v478_v57 }
 0x1ca   : > { %510 = vst.msk [vmem:[%s226_s27 + $0x18] sm:$0xff] %vm506_vm1, %v487_v56 }
 0x1cb   : > { %508 = vst.msk [vmem:[%s226_s27 + $0x8] sm:$0xff] %vm506_vm1, %v479_v58 }
 0x1cd   : > { %v650_v59 = vpop.f32.mrb[0].mxu1 }
 0x1ce   : > { %v500_v60 = vadd.f32 %v650_v59, %v590_v50  ;;  %v491_v61 = vpop.f32.mrb[1].mxu1 }
 0x1cf   : > { %v492_v62 = vadd.f32 %v590_v50, %v491_v61  ;;  %v651_v63 = vpop.f32.mrb[2].mxu1 }
 0x1d0   : > { %513 = vst.msk [vmem:[%s226_s27 + $0x30] sm:$0xff] %vm506_vm1, %v500_v60  ;;  %v503_v0 = vadd.f32 %v651_v63, %v590_v50  ;;  %v494_v1 = vpop.f32.mrb[3].mxu1 }
 0x1d1   : > { %511 = vst.msk [vmem:[%s226_s27 + $0x20] sm:$0xff] %vm506_vm1, %v492_v62  ;;  %v495_v2 = vadd.f32 %v590_v50, %v494_v1 }
 0x1d2   : > { %514 = vst.msk [vmem:[%s226_s27 + $0x38] sm:$0xff] %vm506_vm1, %v503_v0 }
 0x1d3   : > { %512 = vst.msk [vmem:[%s226_s27 + $0x28] sm:$0xff] %vm506_vm1, %v495_v2 }
 0x1d4 PF: > { %s15_s18 = sadd.s32 1, %s695_s18  }
 0x1d5   : > { %p12_p4 = scmp.ge.s32.totalorder %s15_s18, 4  }
 0x1d7   :  { %14 = sbr.rel (!%p12_p4) target bundleno = 1 (0x1), region = 70 }

// kernel: tpu_custom_call.1
= control target key start
LH: loop header
LB: loop body
LE: loop exit
PB: predicated region body
PF: predicated region fallthrough
CT: control target
= control target key end

     0   :  { %s727_s18 = smov 0   ;;  %s793_s0 = inlined_call_operand.vmem [shape: bf16[128,16], index: 0, kind: input, shape index: {}]   ;;  %s794_s1 = inlined_call_operand.vmem [shape: bf16[16,128], index: 1, kind: input, shape index: {}]   ;;  %s795_s2 = inlined_call_operand.vmem [shape: f32[1,128], index: 2, kind: input, shape index: {}]   ;;  %s796_s3 = inlined_call_operand.vmem [shape: bf16[128,32], index: 3, kind: input, shape index: {}]   ;;  %s797_s4 = inlined_call_operand.vmem [shape: f32[1,32], index: 4, kind: input, shape index: {}]   ;;  %s798_s5 = inlined_call_operand.vmem [shape: f32[128,32], index: 5, kind: output, shape index: {}]  }
   0x1 LB: > { %s571_s19 = sadd.s32 4294967295, %s695_s18   ;;  %p575_p0 = scmp.ge.s32.totalorder %s695_s18, 1  ;;  %s695_s18 = sphi %s727_s18, %s15_s18  }
   0x2   : > { %p188_p1 = scmp.lt.s32.totalorder %s695_s18, 3 }
   0x4   : > { %p189_p2 = pnand %p575_p0, %p188_p1 }
   0x5   : > { %v676_v0 = vld [vmem:[%s794_s1] sm:$0xff] (!%p189_p2)   ;;  %s576_s22 = sshll.u32 (!%p189_p2), %s571_s19, 3  ;;  %v682_v2 = vld [vmem:[%s796_s3 + $0x8] sm:$0xff] (!%p189_p2)   ;;  %vm272_vm0 = vcmask (!%p189_p2), 130048   ;;  %v683_v3 = vld [vmem:[%s796_s3 + $0x10] sm:$0xff] (!%p189_p2)   ;;  %vm506_vm1 = vcmask (!%p189_p2), 261120  }
   0x6   : > { %192 = sbr.rel (%p189_p2) target bundleno = 468 (0x1d4), region = 40  ;;  %p217_p3 = scmp.lt.s32.totalorder (!%p189_p2), %s576_s22, 15  ;;  %618 = vmatprep.subr.bf16.mxu0 (!%p189_p2), %v676_v0  ;;  %v681_v1 = vld [vmem:[%s796_s3] sm:$0xff] (!%p189_p2)   ;;  %v684_v7 = vld [vmem:[%s796_s3 + $0x18] sm:$0xff] (!%p189_p2)   ;;  %v686_v10 = vld [vmem:[%s796_s3 + $0x28] sm:$0xff] (!%p189_p2)  }
   0x7   : > { %619 = vmatpush3.bf16.msra.mxu0 (!%p189_p2), %v676_v0  ;;  %652 = vmatprep.subr.bf16.mxu1 (!%p189_p2), %v681_v1  ;;  %v685_v9 = vld [vmem:[%s796_s3 + $0x20] sm:$0xff] (!%p189_p2)   ;;  %v687_v11 = vld [vmem:[%s796_s3 + $0x30] sm:$0xff] (!%p189_p2)   ;;  %v688_v12 = vld [vmem:[%s796_s3 + $0x38] sm:$0xff] (!%p189_p2)  }
   0x8   : > { %628 = vmatprep.subr.bf16.mxu0 (!%p189_p2), %v681_v1  ;;  %660 = vmatpush3.bf16.msra.mxu1 (!%p189_p2), %v681_v1  ;;  %v580_v13 = vld [vmem:[%s795_s2] ss:$0 sm:$0xff] (!%p189_p2) }
   0x9   : > { %653 = vmatprep.subr.bf16.mxu1 (!%p189_p2), %v682_v2  ;;  %v590_v50 = vld [vmem:[%s797_s4] ss:$0 sm:$0xff] (!%p189_p2) }
   0xc   : > { %661 = vmatpush3.bf16.msra.mxu1 (!%p189_p2), %v682_v2 }
   0xd   : > { %s800_s22 = smov (!%p217_p3, %s576_s22), 15  ;;  %654 = vmatprep.subr.bf16.mxu1 %v683_v3 }
   0xe   : > { %s577_s27 = sshll.u32 %s800_s22, 2  ;;  %s579_s21 = sshll.u32 %s800_s22, 3 }
   0xf   : > { %s220_s30 = scalar_lea.vmem %s793_s0, %s577_s27  ;;  %s226_s27 = scalar_lea.vmem %s798_s5, %s579_s21 }
  0x10   : > { %v677_v4 = vld [vmem:[%s220_s30] sm:$0xff]   ;;  %v678_v5 = vld [vmem:[%s220_s30 + $0x8] sm:$0xff]   ;;  %v679_v6 = vld [vmem:[%s220_s30 + $0x10] sm:$0xff]   ;;  %662 = vmatpush3.bf16.msra.mxu1 %v683_v3 }
  0x11   : > { %620 = vmatprep.mubr.msk.bf16.mxu0 %vm272_vm0, %v677_v4  ;;  %v680_v8 = vld [vmem:[%s220_s30 + $0x18] sm:$0xff]   ;;  %655 = vmatprep.subr.bf16.mxu1 %v684_v7 }
  0x12   : > { %621 = vmatmul.mubr.msk.bf16.vlgmr.msra.gmra.mrb[0].mxu0 %vm272_vm0, %v678_v5 }
  0x13   : > { %624 = vmatprep.mubr.msk.bf16.mxu0 %vm272_vm0, %v679_v6  ;;  %629 = vmatpush3.bf16.msra.mxu0 %v681_v1 }
  0x14   : > { %630 = vmatprep.subr.bf16.mxu0 %v682_v2  ;;  %663 = vmatpush3.bf16.msra.mxu1 %v684_v7 }
  0x15   : > { %656 = vmatprep.subr.bf16.mxu1 %v685_v9 }
  0x17   : > { %631 = vmatpush3.bf16.msra.mxu0 %v682_v2 }
  0x18   : > { %632 = vmatprep.subr.bf16.mxu0 %v683_v3  ;;  %664 = vmatpush3.bf16.msra.mxu1 %v685_v9 }
  0x19   : > { %657 = vmatprep.subr.bf16.mxu1 %v686_v10 }
  0x1a   : > { %625 = vmatmul.mubr.msk.bf16.gmra.mrb[4].mxu0 %vm272_vm0, %v680_v8 }
  0x1b   : > { %633 = vmatpush3.bf16.msra.mxu0 %v683_v3 }
  0x1c   : > { %634 = vmatprep.subr.bf16.mxu0 %v684_v7  ;;  %665 = vmatpush3.bf16.msra.mxu1 %v686_v10 }
  0x1d   : > { %658 = vmatprep.subr.bf16.mxu1 %v687_v11 }
  0x1f   : > { %635 = vmatpush3.bf16.msra.mxu0 %v684_v7 }
  0x20   : > { %636 = vmatprep.subr.bf16.mxu0 %v685_v9  ;;  %666 = vmatpush3.bf16.msra.mxu1 %v687_v11 }
  0x21   : > { %659 = vmatprep.subr.bf16.mxu1 %v688_v12 }
  0x23   : > { %637 = vmatpush3.bf16.msra.mxu0 %v685_v9 }
  0x24   : > { %638 = vmatprep.subr.bf16.mxu0 %v686_v10  ;;  %667 = vmatpush3.bf16.msra.mxu1 %v688_v12 }
  0x27   : > { %639 = vmatpush3.bf16.msra.mxu0 %v686_v10 }
  0x28   : > { %640 = vmatprep.subr.bf16.mxu0 %v687_v11 }
  0x2b   : > { %641 = vmatpush3.bf16.msra.mxu0 %v687_v11 }
  0x2c   : > { %642 = vmatprep.subr.bf16.mxu0 %v688_v12 }
  0x2f   : > { %643 = vmatpush3.bf16.msra.mxu0 %v688_v12 }
  0xe5   : > { %v622_v14 = vpop.f32.mrb[0].mxu0 }
  0xe6   : > { %v328_v15 = vadd.f32 %v622_v14, %v580_v13  ;;  %v319_v16 = vpop.f32.mrb[1].mxu0 }
  0xe7   : > { %v320_v17 = vadd.f32 %v580_v13, %v319_v16  ;;  %v623_v18 = vpop.f32.mrb[2].mxu0 }
  0xe8   : > { %v352_v19 = vmul.f32 0.2, %v328_v15  ;;  %v331_v20 = vadd.f32 %v623_v18, %v580_v13  ;;  %v322_v21 = vpop.f32.mrb[3].mxu0 }
  0xe9   : > { %v350_v22 = vmul.f32 0.2, %v320_v17  ;;  %v323_v23 = vadd.f32 %v580_v13, %v322_v21 }
  0xea   : > { %v353_v24 = vmul.f32 0.2, %v331_v20  ;;  %v360_v26 = vmax.f32 %v328_v15, %v352_v19 }
  0xeb   : > { %v351_v25 = vmul.f32 0.2, %v323_v23  ;;  %v358_v28 = vmax.f32 %v320_v17, %v350_v22 }
  0xec   : > { %v361_v27 = vmax.f32 %v331_v20, %v353_v24 }
  0xed   : > { %v359_v29 = vmax.f32 %v323_v23, %v351_v25  ;;  %v626_v30 = vpop.f32.mrb[4].mxu0 }
  0xee   : > { %v367_v31 = vpack.c.bf16 %v361_v27, %v360_v26  ;;  %v344_v32 = vadd.f32 %v626_v30, %v580_v13  ;;  %v335_v33 = vpop.f32.mrb[5].mxu0 }
  0xef   : > { %v336_v34 = vadd.f32 %v580_v13, %v335_v33  ;;  %v627_v35 = vpop.f32.mrb[6].mxu0  ;;  %v366_v36 = vpack.c.bf16 %v359_v29, %v358_v28 }
  0xf0   : > { %v356_v37 = vmul.f32 0.2, %v344_v32  ;;  %v347_v38 = vadd.f32 %v627_v35, %v580_v13  ;;  %v338_v39 = vpop.f32.mrb[7].mxu0 }
  0xf1   : > { %v354_v40 = vmul.f32 0.2, %v336_v34  ;;  %v339_v41 = vadd.f32 %v580_v13, %v338_v39  ;;  %644 = vmatprep.mubr.bf16.mxu0 %v366_v36 }
  0xf2   : > { %v357_v42 = vmul.f32 0.2, %v347_v38  ;;  %645 = vmatmul.mubr.bf16.vlgmr.msra.gmra.mrb[8].mxu0 %v367_v31  ;;  %v364_v44 = vmax.f32 %v344_v32, %v356_v37 }
  0xf3   : > { %v355_v43 = vmul.f32 0.2, %v339_v41  ;;  %v362_v46 = vmax.f32 %v336_v34, %v354_v40 }
  0xf4   : > { %v365_v45 = vmax.f32 %v347_v38, %v357_v42 }
  0xf5   : > { %v363_v47 = vmax.f32 %v339_v41, %v355_v43 }
  0xf6   : > { %v369_v48 = vpack.c.bf16 %v365_v45, %v364_v44 }
  0xf7   : > { %v368_v49 = vpack.c.bf16 %v363_v47, %v362_v46 }
  0xf9   : > { %648 = vmatprep.mubr.bf16.mxu1 %v368_v49 }
  0xfa   : > { %649 = vmatmul.mubr.bf16.vlgmr.msra.gmra.mrb[0].mxu1 %v369_v48 }
 0x1c5   : > { %v646_v51 = vpop.f32.mrb[8].mxu0 }
 0x1c6   : > { %v484_v52 = vadd.f32 %v646_v51, %v590_v50  ;;  %v475_v53 = vpop.f32.mrb[9].mxu0 }
 0x1c7   : > { %v476_v54 = vadd.f32 %v590_v50, %v475_v53  ;;  %v647_v55 = vpop.f32.mrb[10].mxu0 }
 0x1c8   : > { %509 = vst.msk [vmem:[%s226_s27 + $0x10] sm:$0xff] %vm506_vm1, %v484_v52  ;;  %v487_v56 = vadd.f32 %v647_v55, %v590_v50  ;;  %v478_v57 = vpop.f32.mrb[11].mxu0 }
 0x1c9   : > { %507 = vst.msk [vmem:[%s226_s27] sm:$0xff] %vm506_vm1, %v476_v54  ;;  %v479_v58 = vadd.f32 %v590_v50, %v478_v57 }
 0x1ca   : > { %510 = vst.msk [vmem:[%s226_s27 + $0x18] sm:$0xff] %vm506_vm1, %v487_v56 }
 0x1cb   : > { %508 = vst.msk [vmem:[%s226_s27 + $0x8] sm:$0xff] %vm506_vm1, %v479_v58 }
 0x1cd   : > { %v650_v59 = vpop.f32.mrb[0].mxu1 }
 0x1ce   : > { %v500_v60 = vadd.f32 %v650_v59, %v590_v50  ;;  %v491_v61 = vpop.f32.mrb[1].mxu1 }
 0x1cf   : > { %v492_v62 = vadd.f32 %v590_v50, %v491_v61  ;;  %v651_v63 = vpop.f32.mrb[2].mxu1 }
 0x1d0   : > { %513 = vst.msk [vmem:[%s226_s27 + $0x30] sm:$0xff] %vm506_vm1, %v500_v60  ;;  %v503_v0 = vadd.f32 %v651_v63, %v590_v50  ;;  %v494_v1 = vpop.f32.mrb[3].mxu1 }
 0x1d1   : > { %511 = vst.msk [vmem:[%s226_s27 + $0x20] sm:$0xff] %vm506_vm1, %v492_v62  ;;  %v495_v2 = vadd.f32 %v590_v50, %v494_v1 }
 0x1d2   : > { %514 = vst.msk [vmem:[%s226_s27 + $0x38] sm:$0xff] %vm506_vm1, %v503_v0 }
 0x1d3   : > { %512 = vst.msk [vmem:[%s226_s27 + $0x28] sm:$0xff] %vm506_vm1, %v495_v2 }
 0x1d4 PF: > { %s15_s18 = sadd.s32 1, %s695_s18  }
 0x1d5   : > { %p12_p4 = scmp.ge.s32.totalorder %s15_s18, 4  }
 0x1d7   :  { %14 = sbr.rel (!%p12_p4) target bundleno = 1 (0x1), region = 70 }

</bundles_post_ra>
